<compile_context>
chip_gen: v7x
topology: tpu7x:2x2x1
jax: 0.10.0
libtpu: 0.0.40
codegen_flags: <defaults>
</compile_context>

<pallas_src>
import functools

import jax
import jax.numpy as jnp
from jax.experimental import pallas as pl
from jax.experimental.pallas import tpu as pltpu


def _decorator_kernel_cond(text_hbm, w_hbm, out_hbm, sem, *, seq_len,
                           num_tokens):
    """Conditional path: out[b] = [text[b]; weight] for the current batch b."""
    b = pl.program_id(0)
    text_cp = pltpu.make_async_copy(
        text_hbm.at[b], out_hbm.at[b, pl.ds(0, seq_len)], sem.at[0])
    tail_cp = pltpu.make_async_copy(
        w_hbm, out_hbm.at[b, pl.ds(seq_len, num_tokens)], sem.at[1])
    text_cp.start()
    tail_cp.start()
    text_cp.wait()
    tail_cp.wait()


def _decorator_kernel_uncond(text_hbm, out_hbm, zero_buf, sem, *, seq_len,
                             num_tokens):
    """Unconditional path: out[b] = [text[b]; zeros]. Weight never touched."""
    b = pl.program_id(0)
    text_cp = pltpu.make_async_copy(
        text_hbm.at[b], out_hbm.at[b, pl.ds(0, seq_len)], sem.at[0])
    text_cp.start()
    # Tiny (T, D) zero tile, filled in VMEM and DMA'd into the tail rows.
    # Re-zeroing every grid step is cheap (T*D elems) and keeps the kernel
    # megacore-safe (no reliance on a program_id==0 init when the batch axis
    # is split across cores).
    zero_buf[...] = jnp.zeros_like(zero_buf)
    tail_cp = pltpu.make_async_copy(
        zero_buf, out_hbm.at[b, pl.ds(seq_len, num_tokens)], sem.at[1])
    tail_cp.start()
    text_cp.wait()
    tail_cp.wait()


def decorator_forward(text_embeds: jax.Array, weight: jax.Array,
                      is_unconditional: bool = False) -> jax.Array:
    """JAX/Pallas equivalent of Decorator.forward.

    text_embeds: [B, S, D]
    weight:      [num_tokens, D]  (float32 parameter)
    returns:     [B, S + num_tokens, D] with dtype of text_embeds
    """
    B, S, D = text_embeds.shape
    T, Dw = weight.shape
    assert Dw == D, "token_size must match the text embedding dim"

    out_dtype = text_embeds.dtype
    out_shape = jax.ShapeDtypeStruct((B, S + T, D), out_dtype)
    hbm_spec = pl.BlockSpec(memory_space=pl.ANY)
    compiler_params = pltpu.CompilerParams(
        dimension_semantics=("parallel",))

    if is_unconditional:
        kernel = functools.partial(
            _decorator_kernel_uncond, seq_len=S, num_tokens=T)
        return pl.pallas_call(
            kernel,
            out_shape=out_shape,
            grid_spec=pltpu.PrefetchScalarGridSpec(
                num_scalar_prefetch=0,
                grid=(B,),
                in_specs=[hbm_spec],
                out_specs=hbm_spec,
                scratch_shapes=[
                    pltpu.VMEM((T, D), out_dtype),
                    pltpu.SemaphoreType.DMA((2,)),
                ]),
            compiler_params=compiler_params,
        )(text_embeds)

    # Match the PyTorch dtype handling: the tiny (T, D) parameter is cast to
    # the activation dtype once, outside the kernel, so the in-kernel tail
    # copy is a plain DMA (no per-batch cast, no vreg pass).
    if weight.dtype != out_dtype:
        weight = weight.astype(out_dtype)

    kernel = functools.partial(
        _decorator_kernel_cond, seq_len=S, num_tokens=T)
    return pl.pallas_call(
        kernel,
        out_shape=out_shape,
        grid_spec=pltpu.PrefetchScalarGridSpec(
            num_scalar_prefetch=0,
            grid=(B,),
            in_specs=[hbm_spec, hbm_spec],
            out_specs=hbm_spec,
            scratch_shapes=[pltpu.SemaphoreType.DMA((2,))]),
        compiler_params=compiler_params,
    )(text_embeds, weight)


if __name__ == "__main__":
    # Small, deterministic problem: batch=2, seq=8, hidden=128, num_tokens=4
    # (token_size must equal the hidden dim).
    key = jax.random.PRNGKey(0)
    k_text, k_w = jax.random.split(key)

    B, S, D = 2, 8, 128
    NUM_TOKENS = 4

    text_embeds = jax.random.normal(k_text, (B, S, D), dtype=jnp.float32)
    # Deterministic parameter init (stand-in for torch.randn in __init__).
    weight = jax.random.normal(k_w, (NUM_TOKENS, D), dtype=jnp.float32)

    # --- Conditional path (f32) ---
    out = decorator_forward(text_embeds, weight, is_unconditional=False)
    out = jax.block_until_ready(out)
    ref = jnp.concatenate(
        [text_embeds,
         jnp.broadcast_to(weight[None], (B, NUM_TOKENS, D)).astype(
             text_embeds.dtype)],
        axis=-2)
    assert out.shape == (B, S + NUM_TOKENS, D)
    assert jnp.allclose(out, ref)

    # --- Unconditional path (decorator tokens replaced with zeros) ---
    out_uncond = decorator_forward(text_embeds, weight, is_unconditional=True)
    out_uncond = jax.block_until_ready(out_uncond)
    ref_uncond = jnp.concatenate(
        [text_embeds, jnp.zeros((B, NUM_TOKENS, D), text_embeds.dtype)],
        axis=-2)
    assert jnp.allclose(out_uncond, ref_uncond)

    # --- Mixed-dtype path (bf16 activations, f32 parameter) ---
    text_bf16 = text_embeds.astype(jnp.bfloat16)
    out_bf16 = decorator_forward(text_bf16, weight, is_unconditional=False)
    out_bf16 = jax.block_until_ready(out_bf16)
    ref_bf16 = jnp.concatenate(
        [text_bf16,
         jnp.broadcast_to(weight[None], (B, NUM_TOKENS, D)).astype(
             jnp.bfloat16)],
        axis=-2)
    assert out_bf16.dtype == jnp.bfloat16
    assert jnp.allclose(out_bf16.astype(jnp.float32),
                        ref_bf16.astype(jnp.float32))

    print("KERNEL_OK")
</pallas_src>

<mosaic_0001>
module attributes {stable_mosaic.version = 11 : i64} {
  func.func @_decorator_kernel_cond(%arg0: i32, %arg1: memref<2x8x128xf32, #tpu.memory_space<any>>, %arg2: memref<4x128xf32, #tpu.memory_space<any>>, %arg3: memref<2x12x128xf32, #tpu.memory_space<any>>, %arg4: memref<2x!tpu.dma_semaphore, #tpu.memory_space<semaphore_mem>>) attributes {dimension_semantics = [#tpu.dimension_semantics<parallel>], iteration_bounds = array<i64: 2>, scalar_prefetch = 0 : i64, scratch_operands = 1 : i64, tpu.core_type = #tpu.core_type<tc>, window_params = [{}, {}, {}]} {
    %c0_i32 = arith.constant 0 : i32
    %c0_i32_0 = arith.constant 0 : i32
    %c0_i32_1 = arith.constant 0 : i32
    %0 = tpu.memref_slice %arg1[%arg0, %c0_i32_0, %c0_i32_1] : memref<2x8x128xf32, #tpu.memory_space<any>> -> memref<1x8x128xf32, #tpu.memory_space<any>>
    %1 = tpu.memref_squeeze %0 : memref<1x8x128xf32, #tpu.memory_space<any>> -> memref<8x128xf32, #tpu.memory_space<any>>
    %c0_i32_2 = arith.constant 0 : i32
    %c0_i32_3 = arith.constant 0 : i32
    %2 = tpu.memref_slice %arg3[%arg0, %c0_i32_2, %c0_i32_3] : memref<2x12x128xf32, #tpu.memory_space<any>> -> memref<1x8x128xf32, #tpu.memory_space<any>>
    %3 = tpu.memref_squeeze %2 : memref<1x8x128xf32, #tpu.memory_space<any>> -> memref<8x128xf32, #tpu.memory_space<any>>
    %4 = tpu.memref_slice %arg4[%c0_i32] : memref<2x!tpu.dma_semaphore, #tpu.memory_space<semaphore_mem>> -> memref<1x!tpu.dma_semaphore, #tpu.memory_space<semaphore_mem>>
    %5 = tpu.memref_squeeze %4 : memref<1x!tpu.dma_semaphore, #tpu.memory_space<semaphore_mem>> -> memref<!tpu.dma_semaphore, #tpu.memory_space<semaphore_mem>>
    tpu.enqueue_dma source(%1 : memref<8x128xf32, #tpu.memory_space<any>>) target(%3 : memref<8x128xf32, #tpu.memory_space<any>>) target_semaphore(%5 : memref<!tpu.dma_semaphore, #tpu.memory_space<semaphore_mem>>)
    %c1_i32 = arith.constant 1 : i32
    %c8_i32 = arith.constant 8 : i32
    %c0_i32_4 = arith.constant 0 : i32
    %6 = tpu.memref_slice %arg3[%arg0, %c8_i32, %c0_i32_4] : memref<2x12x128xf32, #tpu.memory_space<any>> -> memref<1x4x128xf32, #tpu.memory_space<any>>
    %7 = tpu.memref_squeeze %6 : memref<1x4x128xf32, #tpu.memory_space<any>> -> memref<4x128xf32, #tpu.memory_space<any>>
    %8 = tpu.memref_slice %arg4[%c1_i32] : memref<2x!tpu.dma_semaphore, #tpu.memory_space<semaphore_mem>> -> memref<1x!tpu.dma_semaphore, #tpu.memory_space<semaphore_mem>>
    %9 = tpu.memref_squeeze %8 : memref<1x!tpu.dma_semaphore, #tpu.memory_space<semaphore_mem>> -> memref<!tpu.dma_semaphore, #tpu.memory_space<semaphore_mem>>
    tpu.enqueue_dma source(%arg2 : memref<4x128xf32, #tpu.memory_space<any>>) target(%7 : memref<4x128xf32, #tpu.memory_space<any>>) target_semaphore(%9 : memref<!tpu.dma_semaphore, #tpu.memory_space<semaphore_mem>>)
    %c0_i32_5 = arith.constant 0 : i32
    %c0_i32_6 = arith.constant 0 : i32
    %c0_i32_7 = arith.constant 0 : i32
    %10 = tpu.memref_slice %arg1[%arg0, %c0_i32_6, %c0_i32_7] : memref<2x8x128xf32, #tpu.memory_space<any>> -> memref<1x8x128xf32, #tpu.memory_space<any>>
    %11 = tpu.memref_squeeze %10 : memref<1x8x128xf32, #tpu.memory_space<any>> -> memref<8x128xf32, #tpu.memory_space<any>>
    %c0_i32_8 = arith.constant 0 : i32
    %c0_i32_9 = arith.constant 0 : i32
    %12 = tpu.memref_slice %arg3[%arg0, %c0_i32_8, %c0_i32_9] : memref<2x12x128xf32, #tpu.memory_space<any>> -> memref<1x8x128xf32, #tpu.memory_space<any>>
    %13 = tpu.memref_squeeze %12 : memref<1x8x128xf32, #tpu.memory_space<any>> -> memref<8x128xf32, #tpu.memory_space<any>>
    %14 = tpu.memref_slice %arg4[%c0_i32_5] : memref<2x!tpu.dma_semaphore, #tpu.memory_space<semaphore_mem>> -> memref<1x!tpu.dma_semaphore, #tpu.memory_space<semaphore_mem>>
    %15 = tpu.memref_squeeze %14 : memref<1x!tpu.dma_semaphore, #tpu.memory_space<semaphore_mem>> -> memref<!tpu.dma_semaphore, #tpu.memory_space<semaphore_mem>>
    tpu.wait_dma2 semaphore(%15 : memref<!tpu.dma_semaphore, #tpu.memory_space<semaphore_mem>>) src(%11 : memref<8x128xf32, #tpu.memory_space<any>>) dst(%13 : memref<8x128xf32, #tpu.memory_space<any>>)
    %c1_i32_10 = arith.constant 1 : i32
    %c8_i32_11 = arith.constant 8 : i32
    %c0_i32_12 = arith.constant 0 : i32
    %16 = tpu.memref_slice %arg3[%arg0, %c8_i32_11, %c0_i32_12] : memref<2x12x128xf32, #tpu.memory_space<any>> -> memref<1x4x128xf32, #tpu.memory_space<any>>
    %17 = tpu.memref_squeeze %16 : memref<1x4x128xf32, #tpu.memory_space<any>> -> memref<4x128xf32, #tpu.memory_space<any>>
    %18 = tpu.memref_slice %arg4[%c1_i32_10] : memref<2x!tpu.dma_semaphore, #tpu.memory_space<semaphore_mem>> -> memref<1x!tpu.dma_semaphore, #tpu.memory_space<semaphore_mem>>
    %19 = tpu.memref_squeeze %18 : memref<1x!tpu.dma_semaphore, #tpu.memory_space<semaphore_mem>> -> memref<!tpu.dma_semaphore, #tpu.memory_space<semaphore_mem>>
    tpu.wait_dma2 semaphore(%19 : memref<!tpu.dma_semaphore, #tpu.memory_space<semaphore_mem>>) src(%arg2 : memref<4x128xf32, #tpu.memory_space<any>>) dst(%17 : memref<4x128xf32, #tpu.memory_space<any>>)
    return
  }
}

</mosaic_0001>

<bundles_post_ra>
// kernel: tpu_custom_call.1
= control target key start
LH: loop header
LB: loop body
LE: loop exit
PB: predicated region body
PF: predicated region fallthrough
CT: control target
= control target key end

     0   :  { %s163_s9 = smov 0   ;;  %s200_s0 = inlined_call_operand.hbm [shape: f32[2,8,128], index: 0, kind: input, shape index: {}]   ;;  %s201_s1 = inlined_call_operand.hbm [shape: f32[4,128], index: 1, kind: input, shape index: {}]   ;;  %s202_s2 = inlined_call_operand.vmem [shape: f32[2,12,128], index: 2, kind: output, shape index: {}]  }
   0x1 LB: > { %s81_s10 = sshll.u32 %s146_s9, 7  ;;  %s77_s11 = sshll.u32 %s146_s9, 4  ;;  %s146_s9 = sphi %s163_s9, %s12_s9  }
   0x2   : > { %s16_s14 = scalar_lea.hbm %s200_s0, %s81_s10  ;;  %s18_s17 = scalar_lea.vmem %s202_s2, %s77_s11 }
   0x3   : > { %s26_s18 = sshll.u32 %s18_s17, 4  ;;  %s69_s19 = scalar_lea.vmem %s18_s17, 8  ;;  %s27_s18 = int_to_ptr.vmem [resolvable:$true] %s26_s18 }
   0x4   : > { %s40_s20 = sshll.u32 %s69_s19, 4  ;;  %s90_s21 = scalar_lea.hbm %s16_s14, 128  ;;  %s41_s20 = int_to_ptr.vmem [resolvable:$true] %s40_s20 }
   0x5   : > { %p91_p0 = scmp.ne.s32.totalorder %s16_s14, %s90_s21  ;;  %s92_s24 = scalar_lea.hbm %s200_s0, 256 }
   0x6   : > { %p93_p1 = scmp.lt.u32.totalorder %s16_s14, %s200_s0  ;;  %p94_p2 = scmp.lt.u32.totalorder %s92_s24, %s90_s21 }
   0x7   : > { %p96_p4 = scmp.lt.u32.totalorder %s90_s21, %s16_s14 }
   0x8   : > { %p95_p3 = por %p94_p2, %p93_p1 }
   0xa   : > { %p97_p5 = por %p96_p4, %p95_p3 }
   0xc   : > { %p98_p6 = pnand %p97_p5, %p91_p0 }
   0xe   : > { %101 = shalt.err (!%p98_p6)  }
   0xf   : > { %s102_s27 = scalar_lea.vmem %s27_s18, 128  ;;  %s104_s30 = sshll.u32 %s202_s2, 4  ;;  %s105_s30 = int_to_ptr.vmem [resolvable:$false] %s104_s30 }
  0x10   : > { %p103_p7 = scmp.ne.s32.totalorder %s27_s18, %s102_s27  ;;  %s106_s3 = scalar_lea.vmem %s105_s30, 512 }
  0x11   : > { %p107_p8 = scmp.lt.s32.totalorder %s27_s18, %s105_s30  ;;  %p108_p9 = scmp.lt.s32.totalorder %s106_s3, %s102_s27 }
  0x13   : > { %p109_p10 = por %p108_p9, %p107_p8 }
  0x15   : > { %p110_p11 = pnand %p109_p10, %p103_p7 }
  0x17   : > { %113 = shalt.err (!%p110_p11)  }
  0x18   : > { %29 = dma.hbm_to_vmem [thread:$0]  %s16_s14, 128, %s27_s18, [#allocation2] }
  0x19   : > { %s114_s6 = scalar_lea.hbm %s201_s1, 64 }
  0x1a   : > { %p115_p12 = scmp.ne.s32.totalorder %s201_s1, %s114_s6  ;;  %p118_p13 = scmp.lt.u32.totalorder %s114_s6, %s201_s1 }
  0x1c   : > { %p120_p0 = pnand %p118_p13, %p115_p12 }
  0x1e   : > { %123 = shalt.err (!%p120_p0)  }
  0x1f   : > { %s124_s12 = scalar_lea.vmem %s41_s20, 64  ;;  %p129_p2 = scmp.lt.s32.totalorder %s41_s20, %s105_s30 }
  0x20   : > { %p125_p1 = scmp.ne.s32.totalorder %s41_s20, %s124_s12  ;;  %p130_p3 = scmp.lt.s32.totalorder %s106_s3, %s124_s12 }
  0x22   : > { %p131_p4 = por %p130_p3, %p129_p2 }
  0x24   : > { %p132_p5 = pnand %p131_p4, %p125_p1 }
  0x26   : > { %135 = shalt.err (!%p132_p5)  }
  0x27   : > { %43 = dma.hbm_to_vmem [thread:$0]  %s201_s1, 64, %s41_s20, [#allocation2 + $0x1] }
  0x28   : > { %140 = dma.done.wait [#allocation2], 128 }
  0x29   : > { %141 = vsyncadd [#allocation2], 4294967168 }
  0x2a   : > { %142 = dma.done.wait [#allocation2 + $0x1], 64 }
  0x2b   : > { %143 = vsyncadd [#allocation2 + $0x1], 4294967232  ;;  %s12_s9 = sadd.s32 1, %s146_s9  }
  0x2c   : > { %p9_p6 = scmp.ge.s32.totalorder %s12_s9, 2  }
  0x2e   :  { %11 = sbr.rel (!%p9_p6) target bundleno = 1 (0x1), region = 32 }
  0x35   :  { %50 = vsyncmov [#allocation2] }
  0x38   :  { %s51_s15 = vpop.sfrf %50 }
  0x39   :  { %p79_p7 = scmp.ne.s32.totalorder %s51_s15, 0 }
  0x3b   :  { %55 = shalt.err (%p79_p7)  }
  0x3c   :  { %57 = vsyncmov [#allocation2 + $0x1] }
  0x3f   :  { %s58_s16 = vpop.sfrf %57 }
  0x40   :  { %p80_p8 = scmp.ne.s32.totalorder %s58_s16, 0 }
  0x42   :  { %62 = shalt.err (%p80_p8)  }

</bundles_post_ra>
